<compile_context>
chip_gen: v5e
topology: v5e:2x2
jax: 0.10.0
libtpu: 0.0.40
codegen_flags: <defaults>
</compile_context>

<pallas_src>
import functools

import jax
import jax.numpy as jnp
from jax.experimental import pallas as pl
from jax.experimental.pallas import tpu as pltpu


def _round_up(n, m):
    return ((n + m - 1) // m) * m


def mlp_kernel(x_ref, w1_ref, b1_ref, w2_ref, b2_ref, w3_ref, b3_ref, o_ref):
    # Layer 1: Linear + ReLU  (bf16 operands, f32 accumulate, f32 epilogue)
    xb = x_ref[...].astype(jnp.bfloat16)
    h1 = jnp.dot(xb, w1_ref[...], preferred_element_type=jnp.float32)
    h1 = jnp.maximum(h1 + b1_ref[...], 0.0)
    # Layer 2: Linear + ReLU
    h2 = jnp.dot(h1.astype(jnp.bfloat16), w2_ref[...],
                 preferred_element_type=jnp.float32)
    h2 = jnp.maximum(h2 + b2_ref[...], 0.0)
    # Layer 3: Linear (logits), stored bf16 to halve output writeback.
    out = jnp.dot(h2.astype(jnp.bfloat16), w3_ref[...],
                  preferred_element_type=jnp.float32)
    o_ref[...] = (out + b3_ref[...]).astype(o_ref.dtype)


def prepare_params(params):
    """One-time packing: zero-pad to lane-dense widths, cast weights to bf16.

    Hoisted out of the per-call path so the forward does no per-call pad/cast.
    Returns (packed_params, num_classes).
    """
    w1, b1 = params["w1"], params["b1"]
    w2, b2 = params["w2"], params["b2"]
    w3, b3 = params["w3"], params["b3"]
    D, H = w1.shape
    _, C = w3.shape
    H_pad = _round_up(H, 128)   # lane-dense hidden (exactly 128, no wider)
    C_pad = _round_up(C, 128)   # lane-dense output (unmasked vst)

    packed = {
        "w1": jnp.pad(w1, ((0, 0), (0, H_pad - H))).astype(jnp.bfloat16),
        "b1": jnp.pad(b1, ((0, 0), (0, H_pad - H))).astype(jnp.float32),
        "w2": jnp.pad(w2, ((0, H_pad - H), (0, H_pad - H))).astype(jnp.bfloat16),
        "b2": jnp.pad(b2, ((0, 0), (0, H_pad - H))).astype(jnp.float32),
        "w3": jnp.pad(w3, ((0, H_pad - H), (0, C_pad - C))).astype(jnp.bfloat16),
        "b3": jnp.pad(b3, ((0, 0), (0, C_pad - C))).astype(jnp.float32),
    }
    return packed, C


@functools.partial(jax.jit, static_argnames=("num_classes",))
def age_group_classifier(x, packed, *, num_classes):
    """Fused 3-layer MLP forward.

    x: (B, D) float32
    packed: output of prepare_params() (lane-padded, bf16 weights)
    returns: (B, num_classes) float32 logits
    """
    w1p, b1p = packed["w1"], packed["b1"]
    w2p, b2p = packed["w2"], packed["b2"]
    w3p, b3p = packed["w3"], packed["b3"]

    B, D = x.shape
    H_pad = w1p.shape[1]
    C_pad = w3p.shape[1]
    C = num_classes

    # Batch tile: big enough to amortize ~0.35 us/grid-step overhead, but
    # clamped so the grid has >= 2 steps (both v7x TensorCores busy) when B is
    # large. Multiple of 16 keeps bf16 output sublane tiling clean.
    if B <= 16:
        TB = _round_up(max(B, 1), 8)
    else:
        TB = min(1024, _round_up(pl.cdiv(B, 2), 16))
    n_tiles = pl.cdiv(B, TB)

    # Weights/biases: constant index_map -> DMA'd once, resident in VMEM.
    const = lambda a: pl.BlockSpec(a.shape, lambda i: (0, 0))

    flops = 2 * B * (D * H_pad + H_pad * H_pad + H_pad * C_pad)
    bytes_accessed = (x.size * 4
                      + (w1p.size + w2p.size + w3p.size) * 2
                      + (b1p.size + b2p.size + b3p.size) * 4
                      + B * C_pad * 2)

    out = pl.pallas_call(
        mlp_kernel,
        out_shape=jax.ShapeDtypeStruct((B, C_pad), jnp.bfloat16),
        grid_spec=pltpu.PrefetchScalarGridSpec(
            num_scalar_prefetch=0,
            grid=(n_tiles,),
            in_specs=[
                pl.BlockSpec((TB, D), lambda i: (i, 0)),
                const(w1p), const(b1p),
                const(w2p), const(b2p),
                const(w3p), const(b3p),
            ],
            out_specs=pl.BlockSpec((TB, C_pad), lambda i: (i, 0)),
        ),
        compiler_params=pltpu.CompilerParams(
            dimension_semantics=("parallel",)),   # v7x: shard batch over 2 TCs
        cost_estimate=pl.CostEstimate(
            flops=flops, transcendentals=0, bytes_accessed=bytes_accessed),
    )(x, w1p, b1p, w2p, b2p, w3p, b3p)

    # Tiny (B, C) slab: strip lane padding, restore f32 logits semantics.
    return out[:, :C].astype(jnp.float32)


def init_params(key, input_dim, hidden_dim=64, num_classes=10):
    """Deterministic synthetic init (uniform, PyTorch-Linear-style fan_in bound)."""
    ks = jax.random.split(key, 6)

    def linear(kw, kb, fan_in, fan_out):
        bound = 1.0 / jnp.sqrt(fan_in)
        w = jax.random.uniform(kw, (fan_in, fan_out), jnp.float32, -bound, bound)
        b = jax.random.uniform(kb, (1, fan_out), jnp.float32, -bound, bound)
        return w, b

    w1, b1 = linear(ks[0], ks[1], input_dim, hidden_dim)
    w2, b2 = linear(ks[2], ks[3], hidden_dim, hidden_dim)
    w3, b3 = linear(ks[4], ks[5], hidden_dim, num_classes)
    return {"w1": w1, "b1": b1, "w2": w2, "b2": b2, "w3": w3, "b3": b3}


if __name__ == "__main__":
    key = jax.random.PRNGKey(0)
    k_x, k_p = jax.random.split(key)

    batch, input_dim, hidden_dim, num_classes = 8, 32, 64, 10
    x = jax.random.normal(k_x, (batch, input_dim), jnp.float32)
    params = init_params(k_p, input_dim, hidden_dim, num_classes)

    packed, n_cls = prepare_params(params)   # one-time pad + bf16 cast
    out = age_group_classifier(x, packed, num_classes=n_cls)
    out = jax.block_until_ready(out)

    # Reference in plain f32 JAX (kernel uses bf16 matmul operands and bf16
    # logit storage -> loose tolerance).
    h = jnp.maximum(x @ params["w1"] + params["b1"], 0.0)
    h = jnp.maximum(h @ params["w2"] + params["b2"], 0.0)
    ref = h @ params["w3"] + params["b3"]
    assert out.shape == (batch, num_classes)
    assert jnp.allclose(out, ref, atol=3e-2, rtol=3e-2), (
        float(jnp.max(jnp.abs(out - ref))))

    print("KERNEL_OK")
</pallas_src>

<mosaic_0001>
module attributes {stable_mosaic.version = 11 : i64} {
  func.func @mlp_kernel(%arg0: i32, %arg1: memref<8x32xf32, #tpu.memory_space<vmem>>, %arg2: memref<32x128xbf16, #tpu.memory_space<vmem>>, %arg3: memref<1x128xf32, #tpu.memory_space<vmem>>, %arg4: memref<128x128xbf16, #tpu.memory_space<vmem>>, %arg5: memref<1x128xf32, #tpu.memory_space<vmem>>, %arg6: memref<128x128xbf16, #tpu.memory_space<vmem>>, %arg7: memref<1x128xf32, #tpu.memory_space<vmem>>, %arg8: memref<8x128xbf16, #tpu.memory_space<vmem>>) attributes {dimension_semantics = [#tpu.dimension_semantics<parallel>], iteration_bounds = array<i64: 1>, scalar_prefetch = 0 : i64, scratch_operands = 0 : i64, tpu.core_type = #tpu.core_type<tc>, window_params = [{transform_indices = @transform_0, window_bounds = array<i64: 8, 32>}, {pipeline_mode = #tpu.pipeline_mode<synchronous>, transform_indices = @transform_1, window_bounds = array<i64: 32, 128>}, {pipeline_mode = #tpu.pipeline_mode<synchronous>, transform_indices = @transform_2, window_bounds = array<i64: 1, 128>}, {pipeline_mode = #tpu.pipeline_mode<synchronous>, transform_indices = @transform_3, window_bounds = array<i64: 128, 128>}, {pipeline_mode = #tpu.pipeline_mode<synchronous>, transform_indices = @transform_4, window_bounds = array<i64: 1, 128>}, {pipeline_mode = #tpu.pipeline_mode<synchronous>, transform_indices = @transform_5, window_bounds = array<i64: 128, 128>}, {pipeline_mode = #tpu.pipeline_mode<synchronous>, transform_indices = @transform_6, window_bounds = array<i64: 1, 128>}, {transform_indices = @transform_7, window_bounds = array<i64: 8, 128>}]} {
    %c0 = arith.constant 0 : index
    %c0_0 = arith.constant 0 : index
    %0 = vector.load %arg1[%c0, %c0_0] : memref<8x32xf32, #tpu.memory_space<vmem>>, vector<8x32xf32>
    %1 = arith.truncf %0 : vector<8x32xf32> to vector<8x32xbf16>
    %c0_1 = arith.constant 0 : index
    %c0_2 = arith.constant 0 : index
    %2 = vector.load %arg2[%c0_1, %c0_2] : memref<32x128xbf16, #tpu.memory_space<vmem>>, vector<32x128xbf16>
    %cst = arith.constant dense<0.000000e+00> : vector<8x128xf32>
    %3 = tpu.matmul %1, %2, %cst {dimension_numbers = #tpu.dot_dimension_numbers<[1], [0], [0], [1], [0, 0, 1, 1], [], []>} : vector<8x32xbf16>, vector<32x128xbf16>, vector<8x128xf32> -> vector<8x128xf32>
    %c0_3 = arith.constant 0 : index
    %c0_4 = arith.constant 0 : index
    %4 = vector.load %arg3[%c0_3, %c0_4] : memref<1x128xf32, #tpu.memory_space<vmem>>, vector<1x128xf32>
    %5 = vector.broadcast %4 : vector<1x128xf32> to vector<8x128xf32>
    %6 = arith.addf %3, %5 : vector<8x128xf32>
    %cst_5 = arith.constant 0.000000e+00 : f32
    %7 = vector.broadcast %cst_5 : f32 to vector<8x128xf32>
    %8 = arith.maximumf %6, %7 : vector<8x128xf32>
    %9 = arith.truncf %8 : vector<8x128xf32> to vector<8x128xbf16>
    %c0_6 = arith.constant 0 : index
    %c0_7 = arith.constant 0 : index
    %10 = vector.load %arg4[%c0_6, %c0_7] : memref<128x128xbf16, #tpu.memory_space<vmem>>, vector<128x128xbf16>
    %cst_8 = arith.constant dense<0.000000e+00> : vector<8x128xf32>
    %11 = tpu.matmul %9, %10, %cst_8 {dimension_numbers = #tpu.dot_dimension_numbers<[1], [0], [0], [1], [0, 0, 1, 1], [], []>} : vector<8x128xbf16>, vector<128x128xbf16>, vector<8x128xf32> -> vector<8x128xf32>
    %c0_9 = arith.constant 0 : index
    %c0_10 = arith.constant 0 : index
    %12 = vector.load %arg5[%c0_9, %c0_10] : memref<1x128xf32, #tpu.memory_space<vmem>>, vector<1x128xf32>
    %13 = vector.broadcast %12 : vector<1x128xf32> to vector<8x128xf32>
    %14 = arith.addf %11, %13 : vector<8x128xf32>
    %cst_11 = arith.constant 0.000000e+00 : f32
    %15 = vector.broadcast %cst_11 : f32 to vector<8x128xf32>
    %16 = arith.maximumf %14, %15 : vector<8x128xf32>
    %17 = arith.truncf %16 : vector<8x128xf32> to vector<8x128xbf16>
    %c0_12 = arith.constant 0 : index
    %c0_13 = arith.constant 0 : index
    %18 = vector.load %arg6[%c0_12, %c0_13] : memref<128x128xbf16, #tpu.memory_space<vmem>>, vector<128x128xbf16>
    %cst_14 = arith.constant dense<0.000000e+00> : vector<8x128xf32>
    %19 = tpu.matmul %17, %18, %cst_14 {dimension_numbers = #tpu.dot_dimension_numbers<[1], [0], [0], [1], [0, 0, 1, 1], [], []>} : vector<8x128xbf16>, vector<128x128xbf16>, vector<8x128xf32> -> vector<8x128xf32>
    %c0_15 = arith.constant 0 : index
    %c0_16 = arith.constant 0 : index
    %20 = vector.load %arg7[%c0_15, %c0_16] : memref<1x128xf32, #tpu.memory_space<vmem>>, vector<1x128xf32>
    %21 = vector.broadcast %20 : vector<1x128xf32> to vector<8x128xf32>
    %22 = arith.addf %19, %21 : vector<8x128xf32>
    %23 = arith.truncf %22 : vector<8x128xf32> to vector<8x128xbf16>
    %c0_17 = arith.constant 0 : index
    %c0_18 = arith.constant 0 : index
    %24 = vector.load %arg8[%c0_17, %c0_18] : memref<8x128xbf16, #tpu.memory_space<vmem>>, vector<8x128xbf16>
    tpu.vector_store %arg8[%c0_17, %c0_18], %23 {strides = array<i32>} : memref<8x128xbf16, #tpu.memory_space<vmem>>, vector<8x128xbf16>,
    return
  }
  func.func @transform_0(%arg0: i32) -> (i32, i32) {
    %c0_i32 = arith.constant 0 : i32
    %c0_i32_0 = arith.constant 0 : i32
    return %arg0, %c0_i32 : i32, i32
  }
  func.func @transform_1(%arg0: i32) -> (i32, i32) {
    %c0_i32 = arith.constant 0 : i32
    %c0_i32_0 = arith.constant 0 : i32
    %c0_i32_1 = arith.constant 0 : i32
    return %c0_i32, %c0_i32_0 : i32, i32
  }
  func.func @transform_2(%arg0: i32) -> (i32, i32) {
    %c0_i32 = arith.constant 0 : i32
    %c0_i32_0 = arith.constant 0 : i32
    %c0_i32_1 = arith.constant 0 : i32
    return %c0_i32, %c0_i32_0 : i32, i32
  }
  func.func @transform_3(%arg0: i32) -> (i32, i32) {
    %c0_i32 = arith.constant 0 : i32
    %c0_i32_0 = arith.constant 0 : i32
    %c0_i32_1 = arith.constant 0 : i32
    return %c0_i32, %c0_i32_0 : i32, i32
  }
  func.func @transform_4(%arg0: i32) -> (i32, i32) {
    %c0_i32 = arith.constant 0 : i32
    %c0_i32_0 = arith.constant 0 : i32
    %c0_i32_1 = arith.constant 0 : i32
    return %c0_i32, %c0_i32_0 : i32, i32
  }
  func.func @transform_5(%arg0: i32) -> (i32, i32) {
    %c0_i32 = arith.constant 0 : i32
    %c0_i32_0 = arith.constant 0 : i32
    %c0_i32_1 = arith.constant 0 : i32
    return %c0_i32, %c0_i32_0 : i32, i32
  }
  func.func @transform_6(%arg0: i32) -> (i32, i32) {
    %c0_i32 = arith.constant 0 : i32
    %c0_i32_0 = arith.constant 0 : i32
    %c0_i32_1 = arith.constant 0 : i32
    return %c0_i32, %c0_i32_0 : i32, i32
  }
  func.func @transform_7(%arg0: i32) -> (i32, i32) {
    %c0_i32 = arith.constant 0 : i32
    %c0_i32_0 = arith.constant 0 : i32
    return %arg0, %c0_i32 : i32, i32
  }
}

</mosaic_0001>

<bundles_post_ra>
// kernel: age_group_classifier.1
= control target key start
LH: loop header
LB: loop body
LE: loop exit
PB: predicated region body
PF: predicated region fallthrough
CT: control target
= control target key end

     0   :  { %12 = vsyncpa [#allocation3], 0  ;;  %s613_s0 = inlined_call_operand.hbm [shape: f32[8,32], index: 0, kind: input, shape index: {}]   ;;  %s614_s1 = inlined_call_operand.hbm [shape: bf16[32,128], index: 1, kind: input, shape index: {}]   ;;  %s615_s2 = inlined_call_operand.hbm [shape: f32[1,128], index: 2, kind: input, shape index: {}]   ;;  %s616_s3 = inlined_call_operand.hbm [shape: bf16[128,128], index: 3, kind: input, shape index: {}]   ;;  %s617_s4 = inlined_call_operand.vmem [shape: f32[1,128], index: 4, kind: input, shape index: {}]   ;;  %s618_s5 = inlined_call_operand.hbm [shape: bf16[128,128], index: 5, kind: input, shape index: {}]   ;;  %s619_s6 = inlined_call_operand.vmem [shape: f32[1,128], index: 6, kind: input, shape index: {}]   ;;  %s620_s7 = inlined_call_operand.vmem [shape: bf16[8,128], index: 7, kind: output, shape index: {}]  }
   0x1   :  { %13 = vsyncpa [#allocation5], 0  ;;  %s30_s26 = sshll.u32 %s614_s1, 4  ;;  %s31_s26 = int_to_ptr.hbm [resolvable:$true] %s30_s26 }
   0x2   :  { %14 = vsyncpa [#allocation8], 0  ;;  %s542_s27 = smov [#allocation4]   ;;  %s54_s8 = sshll.u32 %s616_s3, 4  ;;  %s55_s8 = int_to_ptr.hbm [resolvable:$true] %s54_s8 }
   0x3   :  { %s32_s28 = sshll.u32 %s542_s27, 4  ;;  %s543_s9 = smov 64   ;;  %s33_s28 = int_to_ptr.vmem [resolvable:$true] %s32_s28 }
   0x4   :  { %s544_s10 = smov 4   ;;  %s545_s11 = smov [#allocation7]  }
   0x5   :  { %38 = dma.hbm_to_vmem [thread:$0]  %s31_s26, 256, %s33_s28, [#allocation5], %s543_s9, %s543_s9, %s544_s10  }
   0x6   :  { %s56_s12 = sshll.u32 %s545_s11, 4  ;;  %s20_s15 = sshll.u32 %s613_s0, 4  ;;  %s57_s12 = int_to_ptr.vmem [resolvable:$true] %s56_s12  ;;  %s21_s15 = int_to_ptr.hbm [resolvable:$true] %s20_s15 }
   0x7   :  { %62 = dma.hbm_to_vmem [thread:$0]  %s55_s8, 1024, %s57_s12, [#allocation8], %s543_s9, %s543_s9, %s544_s10  }
   0x8   :  { %s44_s17 = sshll.u32 %s615_s2, 4  ;;  %s546_s18 = smov [#allocation2]   ;;  %s45_s17 = int_to_ptr.hbm [resolvable:$true] %s44_s17 }
   0x9   :  { %s22_s19 = sshll.u32 %s546_s18, 4  ;;  %s547_s3 = smov [#allocation6]   ;;  %s23_s19 = int_to_ptr.vmem [resolvable:$true] %s22_s19 }
   0xa   :  { %25 = dma.hbm_to_vmem [thread:$0]  %s21_s15, 128, %s23_s19, [#allocation3]  }
   0xb   :  { %s46_s20 = sshll.u32 %s547_s3, 4  ;;  %s69_s23 = sshll.u32 %s618_s5, 4  ;;  %s47_s20 = int_to_ptr.vmem [resolvable:$true] %s46_s20  ;;  %s70_s23 = int_to_ptr.hbm [resolvable:$true] %s69_s23 }
   0xc   :  { %49 = dma.hbm_to_vmem [thread:$0]  %s45_s17, 16, %s47_s20, [#allocation5]  }
   0xd   :  { %s548_s0 = smov [#allocation9]  }
   0xe   :  { %s71_s24 = sshll.u32 %s548_s0, 4  ;;  %s72_s24 = int_to_ptr.vmem [resolvable:$true] %s71_s24 }
   0xf   :  { %77 = dma.hbm_to_vmem [thread:$0]  %s70_s23, 1024, %s72_s24, [#allocation8], %s543_s9, %s543_s9, %s544_s10  }
  0x10   :  { %536 = dma.done.wait [#allocation3], 128  }
  0x11   :  { %537 = vsyncadd [#allocation3], 4294967168 }
  0x12   :  { %538 = dma.done.wait [#allocation5], 272  }
  0x13   :  { %539 = vsyncadd [#allocation5], 4294967024 }
  0x14   :  { %540 = dma.done.wait [#allocation8], 2048  }
  0x15   :  { %541 = vsyncadd [#allocation8], 4294965248  ;;  %v389_v0 = vld [vmem:[#allocation4 + $0x8] sm:$0xff]  ;;  %v388_v2 = vld [vmem:[#allocation4] sm:$0xff]  ;;  %vm123_vm0 = vcmask 261120  }
  0x16   :  { %v397_v1 = vld [vmem:[#allocation7 + $0x38] sm:$0xff]  ;;  %133 = vmatpush.bf16.msra.mxu0 %v389_v0  ;;  %v101_v3 = vld [vmem:[#allocation2] sm:$0xff]  ;;  %v396_v4 = vld [vmem:[#allocation7 + $0x30] sm:$0xff] }
  0x17   :  { %210 = vmatpush.bf16.msra.mxu1 %v397_v1  ;;  %v102_v5 = vpack.c.bf16 %v101_v3, %v101_v3  ;;  %v395_v6 = vld [vmem:[#allocation7 + $0x28] sm:$0xff]  ;;  %v394_v7 = vld [vmem:[#allocation7 + $0x20] sm:$0xff]  ;;  %v393_v8 = vld [vmem:[#allocation7 + $0x18] sm:$0xff] }
  0x18   :  { %v392_v9 = vld [vmem:[#allocation7 + $0x10] sm:$0xff]  ;;  %v391_v10 = vld [vmem:[#allocation7 + $0x8] sm:$0xff]  ;;  %v390_v11 = vld [vmem:[#allocation7] sm:$0xff] }
  0x19   :  { %v405_v12 = vld [vmem:[#allocation9 + $0x38] sm:$0xff]  ;;  %v404_v13 = vld [vmem:[#allocation9 + $0x30] sm:$0xff]  ;;  %v403_v14 = vld [vmem:[#allocation9 + $0x28] sm:$0xff] }
  0x1a   :  { %134 = vmatpush.bf16.msra.mxu0 %v388_v2  ;;  %293 = vmatpush.bf16.msra.mxu2 %v405_v12  ;;  %v402_v15 = vld [vmem:[#allocation9 + $0x20] sm:$0xff]  ;;  %v401_v16 = vld [vmem:[#allocation9 + $0x18] sm:$0xff]  ;;  %v400_v17 = vld [vmem:[#allocation9 + $0x10] sm:$0xff] }
  0x1b   :  { %211 = vmatpush.bf16.msra.mxu1 %v396_v4  ;;  %v413_v18 = vld [vmem:[#allocation6] ss:$0 sm:$0xff]  ;;  %v399_v24 = vld [vmem:[#allocation9 + $0x8] sm:$0xff]  ;;  %v398_v25 = vld [vmem:[#allocation9] sm:$0xff] }
  0x1c   :  { %v414_v26 = vld [vmem:[%s617_s4] ss:$0 sm:$0xff] }
  0x1d   :  { %323 = vmatmul.msk.bf16.vlgmr.msra.gmra.mxu0 %vm123_vm0, %v102_v5  ;;  %v415_v32 = vld [vmem:[%s619_s6] ss:$0 sm:$0xff] }
  0x1e   :  { %294 = vmatpush.bf16.msra.mxu2 %v404_v13 }
  0x1f   :  { %212 = vmatpush.bf16.msra.mxu1 %v395_v6 }
  0x22   :  { %295 = vmatpush.bf16.msra.mxu2 %v403_v14 }
  0x23   :  { %213 = vmatpush.bf16.msra.mxu1 %v394_v7 }
  0x26   :  { %296 = vmatpush.bf16.msra.mxu2 %v402_v15 }
  0x27   :  { %214 = vmatpush.bf16.msra.mxu1 %v393_v8 }
  0x2a   :  { %297 = vmatpush.bf16.msra.mxu2 %v401_v16 }
  0x2b   :  { %215 = vmatpush.bf16.msra.mxu1 %v392_v9 }
  0x2e   :  { %298 = vmatpush.bf16.msra.mxu2 %v400_v17 }
  0x2f   :  { %216 = vmatpush.bf16.msra.mxu1 %v391_v10 }
  0x32   :  { %299 = vmatpush.bf16.msra.mxu2 %v399_v24 }
  0x33   :  { %217 = vmatpush.bf16.msra.mxu1 %v390_v11 }
  0x36   :  { %300 = vmatpush.bf16.msra.mxu2 %v398_v25 }
  0x9a   :  { %v136_v19 = vpop.f32.mrf.mxu0 }
  0x9b   :  { %v137_v20 = vadd.f32 %v413_v18, %v136_v19 }
  0x9d   :  { %v140_v21 = vmax.f32 %v137_v20, 0.0 }
  0x9f   :  { %v141_v22 = vpack.c.bf16 %v140_v21, %v140_v21 }
  0xa1   :  { %218 = vmatmul.bf16.vlgmr.msra.gmra.mxu1 %v141_v22 }
  0xa2   :  { %v138_v23 = vpop.f32.mrf.mxu0 }
 0x11e   :  { %v219_v27 = vpop.f32.mrf.mxu1 }
 0x11f   :  { %v220_v28 = vadd.f32 %v414_v26, %v219_v27 }
 0x121   :  { %v223_v29 = vmax.f32 %v220_v28, 0.0 }
 0x123   :  { %v224_v30 = vpack.c.bf16 %v223_v29, %v223_v29 }
 0x125   :  { %301 = vmatmul.bf16.vlgmr.msra.gmra.mxu2 %v224_v30 }
 0x126   :  { %v221_v31 = vpop.f32.mrf.mxu1 }
 0x1a8   :  { %v302_v33 = vpop.f32.mrf.mxu2 }
 0x1a9   :  { %v303_v34 = vadd.f32 %v415_v32, %v302_v33 }
 0x1ab   :  { %v306_v35 = vpack.c.bf16 %v303_v34, %v303_v34 }
 0x1ad   :  { %307 = vst [vmem:[%s620_s7] sm:$0xf] %v306_v35 }
 0x1b0   :  { %v304_v36 = vpop.f32.mrf.mxu2 }
 0x1b1   :  { %312 = vsyncpa [#allocation3], 1 }
 0x1b2   :  { %313 = vsyncpa [#allocation5], 1 }
 0x1b3   :  { %314 = vsyncpa [#allocation8], 1 }

</bundles_post_ra>
